<compile_context>
chip_gen: v7x
topology: tpu7x:2x2x1
jax: 0.10.0
libtpu: 0.0.40
codegen_flags: <defaults>
</compile_context>

<pallas_src>
import functools
import math

import jax
import jax.numpy as jnp
from jax.experimental import pallas as pl
from jax.experimental.pallas import tpu as pltpu

LN_EPS = 1e-5  # torch.nn.LayerNorm default


def _round_up(a, b):
    return ((a + b - 1) // b) * b


def _cdiv(a, b):
    return (a + b - 1) // b


def pairwise_diff_block_kernel(x_ref, vec_ref, mat_ref, head_ref, o_ref,
                               *, inv_d, pack):
    """One row tile of the fused LN / Linear / ReLU / head stack.

    x_ref    : (tm, Dp)      input, `pack` tokens per 128-lane row
    vec_ref  : (16, Dp) f32  rows: ln0_g, ln0_b, b1, ln1_g, ln1_b, b2, ln2_g,
                             ln2_b, b3, ln3_g, ln3_b, bout, <zeros>
    mat_ref  : (4, Dp, Dp) bf16  [segment-ones, W1, W2, W3]  (block-diagonal)
    head_ref : (Dp, pack) bf16   block-diagonal head weights
    o_ref    : (tm, pack) f32    one head output per token
    """
    seg = mat_ref[0]                       # (Dp, Dp) block-diagonal ones
    h = x_ref[...].astype(jnp.float32)     # (tm, Dp)

    def layernorm(h, g, b):
        # Per-token (per 32-lane segment) statistics on the MXU: h @ seg
        # returns each token's sum broadcast across its own lane segment.
        # Two-pass (centered) variance avoids E[x^2] - mu^2 cancellation.
        mu = jnp.dot(h.astype(jnp.bfloat16), seg,
                     preferred_element_type=jnp.float32) * inv_d
        d = h - mu
        var = jnp.dot((d * d).astype(jnp.bfloat16), seg,
                      preferred_element_type=jnp.float32) * inv_d
        var = jnp.maximum(var, 0.0)
        return d * jax.lax.rsqrt(var + LN_EPS) * g + b

    def linear(h, k):
        return jnp.dot(h.astype(jnp.bfloat16), mat_ref[k],
                       preferred_element_type=jnp.float32)

    # pre_linear_block: LN -> [Linear -> LN -> ReLU] x 3
    h = layernorm(h, vec_ref[0:1, :], vec_ref[1:2, :])
    h = linear(h, 1) + vec_ref[2:3, :]
    h = jnp.maximum(layernorm(h, vec_ref[3:4, :], vec_ref[4:5, :]), 0.0)
    h = linear(h, 2) + vec_ref[5:6, :]
    h = jnp.maximum(layernorm(h, vec_ref[6:7, :], vec_ref[7:8, :]), 0.0)
    h = linear(h, 3) + vec_ref[8:9, :]
    h = jnp.maximum(layernorm(h, vec_ref[9:10, :], vec_ref[10:11, :]), 0.0)

    # output_head: Linear(D, 1) for every packed token as one MXU matmul.
    out = jnp.dot(h.astype(jnp.bfloat16), head_ref[...],
                  preferred_element_type=jnp.float32)
    bout_row = vec_ref[11:12, :]           # every lane holds the head bias
    out = out + bout_row[:, :pack]
    o_ref[...] = out.astype(o_ref.dtype)


def pairwise_diff_block_v2(x, params, *, tm=1024):
    """x: (..., D) float32/bfloat16.  params in PyTorch layout.  -> (..., 1)."""
    (ln0_w, ln0_b, w1, b1, ln1_w, ln1_b, w2, b2, ln2_w, ln2_b,
     w3, b3, ln3_w, ln3_b, wout, bout) = params

    orig_shape = x.shape
    D = orig_shape[-1]
    M = 1
    for s in orig_shape[:-1]:
        M *= s

    # Token packing: P tokens per 128-lane row when D divides 128.
    if D <= 128 and 128 % D == 0:
        P = 128 // D
        Dp = 128
    else:
        P = 1
        Dp = _round_up(D, 128)

    x2 = x.reshape(M, D)
    pad_tok = (-M) % P
    if pad_tok:
        x2 = jnp.concatenate([x2, jnp.zeros((pad_tok, D), x2.dtype)], axis=0)
    Mq = (M + pad_tok) // P
    if P * D == Dp:
        x_packed = x2.reshape(Mq, Dp)                    # free row-major reshape
    else:
        x_packed = jnp.pad(x2, ((0, 0), (0, Dp - D)))    # fallback path only

    f32 = jnp.float32
    eyeP = jnp.eye(P, dtype=f32)

    def expand_vec(v):                     # (D,) -> (Dp,) tiled per packed token
        v = jnp.tile(v.astype(f32), P)
        return jnp.pad(v, (0, Dp - P * D))

    def expand_mat(m):                     # (D, D) -> (Dp, Dp) block-diagonal
        m = jnp.kron(eyeP, m.astype(f32))
        return jnp.pad(m, ((0, Dp - P * D), (0, Dp - P * D)))

    # (16, Dp) f32 table of all per-lane vectors (one resident VMEM block).
    vec_rows = [expand_vec(v) for v in
                (ln0_w, ln0_b, b1, ln1_w, ln1_b, b2, ln2_w, ln2_b,
                 b3, ln3_w, ln3_b)]
    vec_rows.append(jnp.broadcast_to(bout.astype(f32).reshape(1), (Dp,)))
    vec_rows += [jnp.zeros((Dp,), f32)] * (16 - len(vec_rows))
    vecs = jnp.stack(vec_rows, axis=0)

    # (4, Dp, Dp) bf16 stack: segment-ones matrix (for LN stats on the MXU)
    # plus the three Linear weights, each replicated along the block diagonal.
    mats = jnp.stack([
        expand_mat(jnp.ones((D, D), f32)),
        expand_mat(w1.T), expand_mat(w2.T), expand_mat(w3.T),
    ], axis=0).astype(jnp.bfloat16)

    # (Dp, P) bf16 head weights: one column per packed token.
    head = jnp.pad(jnp.kron(eyeP, wout.astype(f32).reshape(D, 1)),
                   ((0, Dp - P * D), (0, 0))).astype(jnp.bfloat16)

    # Row tile: large (amortize per-step overhead), VMEM-capped (v7x 64 MiB),
    # and small enough to keep >= 2 grid steps for v7x megacore sharding.
    tm_vmem_cap = max(8, (((40 << 20) // (12 * Dp * 4)) // 8) * 8)
    tm_eff = max(8, min(_round_up(tm, 8), tm_vmem_cap,
                        _round_up(_cdiv(Mq, 2), 8)))
    grid = (_cdiv(Mq, tm_eff),)            # partial last block, no row padding

    in_specs = [
        pl.BlockSpec((tm_eff, Dp), lambda i: (i, 0)),
        pl.BlockSpec(vecs.shape, lambda i: (0, 0)),
        pl.BlockSpec(mats.shape, lambda i: (0, 0, 0)),
        pl.BlockSpec(head.shape, lambda i: (0, 0)),
    ]
    out_specs = pl.BlockSpec((tm_eff, P), lambda i: (i, 0))

    param_bytes = int(vecs.size) * 4 + int(mats.size) * 2 + int(head.size) * 2
    x_bytes = x_packed.dtype.itemsize
    vmem_needed = (2 * tm_eff * Dp * x_bytes     # input tile, double buffered
                   + 2 * tm_eff * P * 4          # output tile, double buffered
                   + 2 * param_bytes             # resident params (conservative)
                   + 10 * tm_eff * Dp * 4        # live f32 temporaries
                   + (2 << 20))                  # headroom
    vmem_limit = int(min(max(vmem_needed, 32 << 20), 48 << 20))

    flops = Mq * (2 * Dp * Dp * 11 + 2 * Dp * P) + 40 * Mq * Dp
    cost = pl.CostEstimate(
        flops=int(flops),
        transcendentals=int(4 * Mq * Dp),
        bytes_accessed=int(Mq * Dp * x_bytes + param_bytes + Mq * P * 4),
    )

    kernel = functools.partial(pairwise_diff_block_kernel,
                               inv_d=1.0 / D, pack=P)

    out = pl.pallas_call(
        kernel,
        out_shape=jax.ShapeDtypeStruct((Mq, P), jnp.float32),
        grid_spec=pltpu.PrefetchScalarGridSpec(
            num_scalar_prefetch=0,
            grid=grid,
            in_specs=in_specs,
            out_specs=out_specs,
        ),
        compiler_params=pltpu.CompilerParams(
            dimension_semantics=("parallel",),
            vmem_limit_bytes=vmem_limit,
        ),
        cost_estimate=cost,
    )(x_packed, vecs, mats, head)

    # Token t lives at out[t // P, t % P]; a row-major reshape restores order.
    return out.reshape(-1)[:M].reshape(orig_shape[:-1] + (1,))


def init_params(key, D):
    """Deterministic synthetic params in PyTorch layout."""
    ks = jax.random.split(key, 16)

    def xavier_normal(k, fan_out, fan_in):
        std = math.sqrt(2.0 / (fan_in + fan_out))
        return jax.random.normal(k, (fan_out, fan_in), jnp.float32) * std

    def linear_bias(k, fan_in, fan_out):
        bound = 1.0 / math.sqrt(fan_in)
        return jax.random.uniform(k, (fan_out,), jnp.float32, -bound, bound)

    def ln_params(kw, kb):
        g = 1.0 + 0.1 * jax.random.normal(kw, (D,), jnp.float32)
        b = 0.1 * jax.random.normal(kb, (D,), jnp.float32)
        return g, b

    ln0_w, ln0_b = ln_params(ks[0], ks[1])
    w1 = xavier_normal(ks[2], D, D); b1 = linear_bias(ks[3], D, D)
    ln1_w, ln1_b = ln_params(ks[4], ks[5])
    w2 = xavier_normal(ks[6], D, D); b2 = linear_bias(ks[7], D, D)
    ln2_w, ln2_b = ln_params(ks[8], ks[9])
    w3 = xavier_normal(ks[10], D, D); b3 = linear_bias(ks[11], D, D)
    ln3_w, ln3_b = ln_params(ks[12], ks[13])
    wout = xavier_normal(ks[14], 1, D)   # (1, D)
    bout = linear_bias(ks[15], D, 1)     # (1,)

    return (ln0_w, ln0_b, w1, b1, ln1_w, ln1_b, w2, b2, ln2_w, ln2_b,
            w3, b3, ln3_w, ln3_b, wout, bout)


def reference(x, params):
    (ln0_w, ln0_b, w1, b1, ln1_w, ln1_b, w2, b2, ln2_w, ln2_b,
     w3, b3, ln3_w, ln3_b, wout, bout) = params

    def ln(h, g, b):
        mu = jnp.mean(h, axis=-1, keepdims=True)
        var = jnp.mean((h - mu) ** 2, axis=-1, keepdims=True)
        return (h - mu) * jax.lax.rsqrt(var + LN_EPS) * g + b

    h = x.reshape(-1, x.shape[-1]).astype(jnp.float32)
    h = ln(h, ln0_w, ln0_b)
    h = jnp.maximum(ln(h @ w1.T + b1, ln1_w, ln1_b), 0.0)
    h = jnp.maximum(ln(h @ w2.T + b2, ln2_w, ln2_b), 0.0)
    h = jnp.maximum(ln(h @ w3.T + b3, ln3_w, ln3_b), 0.0)
    out = h @ wout.T + bout
    return out.reshape(x.shape[:-1] + (1,))


if __name__ == "__main__":
    key = jax.random.PRNGKey(0)
    k_x, k_x2, k_x3, k_p = jax.random.split(key, 4)

    B, N, D = 2, 8, 32          # batch, seq, hidden
    params = init_params(k_p, D)

    # 1) Small dense case.
    x = jax.random.normal(k_x, (B, N, D), jnp.float32)
    out = jax.block_until_ready(pairwise_diff_block_v2(x, params))
    ref = reference(x, params)
    assert out.shape == (B, N, 1), out.shape
    assert bool(jnp.all(jnp.isfinite(out)))
    assert bool(jnp.allclose(out, ref, rtol=5e-2, atol=5e-2)), (
        float(jnp.max(jnp.abs(out - ref))))

    # 2) Ragged token count (M=10, not a multiple of the 4-token packing).
    x_ragged = jax.random.normal(k_x2, (2, 5, D), jnp.float32)
    out_r = jax.block_until_ready(pairwise_diff_block_v2(x_ragged, params))
    ref_r = reference(x_ragged, params)
    assert out_r.shape == (2, 5, 1), out_r.shape
    assert bool(jnp.allclose(out_r, ref_r, rtol=5e-2, atol=5e-2)), (
        float(jnp.max(jnp.abs(out_r - ref_r))))

    # 3) Larger case: multi-step grid, partial last block, megacore path.
    x_big = jax.random.normal(k_x3, (4, 1024, D), jnp.float32)
    out_b = jax.block_until_ready(pairwise_diff_block_v2(x_big, params))
    ref_b = reference(x_big, params)
    assert out_b.shape == (4, 1024, 1), out_b.shape
    # Slightly wider atol: max-error tail over 4k tokens with bf16 matmuls.
    assert bool(jnp.allclose(out_b, ref_b, rtol=5e-2, atol=1e-1)), (
        float(jnp.max(jnp.abs(out_b - ref_b))))

    # 4) bfloat16 ingestion (halves the dominant HBM read); looser tolerance.
    out_h = jax.block_until_ready(
        pairwise_diff_block_v2(x.astype(jnp.bfloat16), params))
    assert out_h.shape == (B, N, 1), out_h.shape
    assert bool(jnp.allclose(out_h, ref, rtol=1e-1, atol=1e-1)), (
        float(jnp.max(jnp.abs(out_h - ref))))

    print("KERNEL_OK")
</pallas_src>

<mosaic_0001>
module attributes {stable_mosaic.version = 11 : i64} {
  func.func @pairwise_diff_block_kernel(%arg0: i32, %arg1: memref<8x128xf32, #tpu.memory_space<vmem>>, %arg2: memref<16x128xf32, #tpu.memory_space<vmem>>, %arg3: memref<4x128x128xbf16, #tpu.memory_space<vmem>>, %arg4: memref<128x4xbf16, #tpu.memory_space<vmem>>, %arg5: memref<8x4xf32, #tpu.memory_space<vmem>>) attributes {dimension_semantics = [#tpu.dimension_semantics<parallel>], iteration_bounds = array<i64: 1>, scalar_prefetch = 0 : i64, scratch_operands = 0 : i64, tpu.core_type = #tpu.core_type<tc>, window_params = [{transform_indices = @transform_0, window_bounds = array<i64: 8, 128>}, {pipeline_mode = #tpu.pipeline_mode<synchronous>, transform_indices = @transform_1, window_bounds = array<i64: 16, 128>}, {pipeline_mode = #tpu.pipeline_mode<synchronous>, transform_indices = @transform_2, window_bounds = array<i64: 4, 128, 128>}, {pipeline_mode = #tpu.pipeline_mode<synchronous>, transform_indices = @transform_3, window_bounds = array<i64: 128, 4>}, {transform_indices = @transform_4, window_bounds = array<i64: 8, 4>}]} {
    %c0 = arith.constant 0 : index
    %c0_0 = arith.constant 0 : index
    %c0_1 = arith.constant 0 : index
    %0 = vector.load %arg3[%c0, %c0_0, %c0_1] : memref<4x128x128xbf16, #tpu.memory_space<vmem>>, vector<1x128x128xbf16>
    %1 = vector.shape_cast %0 : vector<1x128x128xbf16> to vector<128x128xbf16>
    %c0_2 = arith.constant 0 : index
    %c0_3 = arith.constant 0 : index
    %2 = vector.load %arg1[%c0_2, %c0_3] : memref<8x128xf32, #tpu.memory_space<vmem>>, vector<8x128xf32>
    %c0_4 = arith.constant 0 : index
    %c0_5 = arith.constant 0 : index
    %3 = vector.load %arg2[%c0_4, %c0_5] : memref<16x128xf32, #tpu.memory_space<vmem>>, vector<1x128xf32>
    %c1 = arith.constant 1 : index
    %c0_6 = arith.constant 0 : index
    %4 = vector.load %arg2[%c1, %c0_6] : memref<16x128xf32, #tpu.memory_space<vmem>>, vector<1x128xf32>
    %5 = arith.truncf %2 : vector<8x128xf32> to vector<8x128xbf16>
    %cst = arith.constant dense<0.000000e+00> : vector<8x128xf32>
    %6 = tpu.matmul %5, %1, %cst {dimension_numbers = #tpu.dot_dimension_numbers<[1], [0], [0], [1], [0, 0, 1, 1], [], []>} : vector<8x128xbf16>, vector<128x128xbf16>, vector<8x128xf32> -> vector<8x128xf32>
    %cst_7 = arith.constant 3.125000e-02 : f32
    %7 = vector.broadcast %cst_7 : f32 to vector<8x128xf32>
    %8 = arith.mulf %6, %7 : vector<8x128xf32>
    %9 = arith.subf %2, %8 : vector<8x128xf32>
    %10 = arith.mulf %9, %9 : vector<8x128xf32>
    %11 = arith.truncf %10 : vector<8x128xf32> to vector<8x128xbf16>
    %cst_8 = arith.constant dense<0.000000e+00> : vector<8x128xf32>
    %12 = tpu.matmul %11, %1, %cst_8 {dimension_numbers = #tpu.dot_dimension_numbers<[1], [0], [0], [1], [0, 0, 1, 1], [], []>} : vector<8x128xbf16>, vector<128x128xbf16>, vector<8x128xf32> -> vector<8x128xf32>
    %cst_9 = arith.constant 3.125000e-02 : f32
    %13 = vector.broadcast %cst_9 : f32 to vector<8x128xf32>
    %14 = arith.mulf %12, %13 : vector<8x128xf32>
    %cst_10 = arith.constant 0.000000e+00 : f32
    %15 = vector.broadcast %cst_10 : f32 to vector<8x128xf32>
    %16 = arith.maximumf %14, %15 : vector<8x128xf32>
    %cst_11 = arith.constant 9.99999974E-6 : f32
    %17 = vector.broadcast %cst_11 : f32 to vector<8x128xf32>
    %18 = arith.addf %16, %17 : vector<8x128xf32>
    %19 = math.rsqrt %18 : vector<8x128xf32>
    %20 = arith.mulf %9, %19 : vector<8x128xf32>
    %21 = vector.broadcast %3 : vector<1x128xf32> to vector<8x128xf32>
    %22 = arith.mulf %20, %21 : vector<8x128xf32>
    %23 = vector.broadcast %4 : vector<1x128xf32> to vector<8x128xf32>
    %24 = arith.addf %22, %23 : vector<8x128xf32>
    %25 = arith.truncf %24 : vector<8x128xf32> to vector<8x128xbf16>
    %c1_12 = arith.constant 1 : index
    %c0_13 = arith.constant 0 : index
    %c0_14 = arith.constant 0 : index
    %26 = vector.load %arg3[%c1_12, %c0_13, %c0_14] : memref<4x128x128xbf16, #tpu.memory_space<vmem>>, vector<1x128x128xbf16>
    %27 = vector.shape_cast %26 : vector<1x128x128xbf16> to vector<128x128xbf16>
    %cst_15 = arith.constant dense<0.000000e+00> : vector<8x128xf32>
    %28 = tpu.matmul %25, %27, %cst_15 {dimension_numbers = #tpu.dot_dimension_numbers<[1], [0], [0], [1], [0, 0, 1, 1], [], []>} : vector<8x128xbf16>, vector<128x128xbf16>, vector<8x128xf32> -> vector<8x128xf32>
    %c2 = arith.constant 2 : index
    %c0_16 = arith.constant 0 : index
    %29 = vector.load %arg2[%c2, %c0_16] : memref<16x128xf32, #tpu.memory_space<vmem>>, vector<1x128xf32>
    %30 = vector.broadcast %29 : vector<1x128xf32> to vector<8x128xf32>
    %31 = arith.addf %28, %30 : vector<8x128xf32>
    %c3 = arith.constant 3 : index
    %c0_17 = arith.constant 0 : index
    %32 = vector.load %arg2[%c3, %c0_17] : memref<16x128xf32, #tpu.memory_space<vmem>>, vector<1x128xf32>
    %c4 = arith.constant 4 : index
    %c0_18 = arith.constant 0 : index
    %33 = vector.load %arg2[%c4, %c0_18] : memref<16x128xf32, #tpu.memory_space<vmem>>, vector<1x128xf32>
    %34 = arith.truncf %31 : vector<8x128xf32> to vector<8x128xbf16>
    %cst_19 = arith.constant dense<0.000000e+00> : vector<8x128xf32>
    %35 = tpu.matmul %34, %1, %cst_19 {dimension_numbers = #tpu.dot_dimension_numbers<[1], [0], [0], [1], [0, 0, 1, 1], [], []>} : vector<8x128xbf16>, vector<128x128xbf16>, vector<8x128xf32> -> vector<8x128xf32>
    %cst_20 = arith.constant 3.125000e-02 : f32
    %36 = vector.broadcast %cst_20 : f32 to vector<8x128xf32>
    %37 = arith.mulf %35, %36 : vector<8x128xf32>
    %38 = arith.subf %31, %37 : vector<8x128xf32>
    %39 = arith.mulf %38, %38 : vector<8x128xf32>
    %40 = arith.truncf %39 : vector<8x128xf32> to vector<8x128xbf16>
    %cst_21 = arith.constant dense<0.000000e+00> : vector<8x128xf32>
    %41 = tpu.matmul %40, %1, %cst_21 {dimension_numbers = #tpu.dot_dimension_numbers<[1], [0], [0], [1], [0, 0, 1, 1], [], []>} : vector<8x128xbf16>, vector<128x128xbf16>, vector<8x128xf32> -> vector<8x128xf32>
    %cst_22 = arith.constant 3.125000e-02 : f32
    %42 = vector.broadcast %cst_22 : f32 to vector<8x128xf32>
    %43 = arith.mulf %41, %42 : vector<8x128xf32>
    %cst_23 = arith.constant 0.000000e+00 : f32
    %44 = vector.broadcast %cst_23 : f32 to vector<8x128xf32>
    %45 = arith.maximumf %43, %44 : vector<8x128xf32>
    %cst_24 = arith.constant 9.99999974E-6 : f32
    %46 = vector.broadcast %cst_24 : f32 to vector<8x128xf32>
    %47 = arith.addf %45, %46 : vector<8x128xf32>
    %48 = math.rsqrt %47 : vector<8x128xf32>
    %49 = arith.mulf %38, %48 : vector<8x128xf32>
    %50 = vector.broadcast %32 : vector<1x128xf32> to vector<8x128xf32>
    %51 = arith.mulf %49, %50 : vector<8x128xf32>
    %52 = vector.broadcast %33 : vector<1x128xf32> to vector<8x128xf32>
    %53 = arith.addf %51, %52 : vector<8x128xf32>
    %cst_25 = arith.constant 0.000000e+00 : f32
    %54 = vector.broadcast %cst_25 : f32 to vector<8x128xf32>
    %55 = arith.maximumf %53, %54 : vector<8x128xf32>
    %56 = arith.truncf %55 : vector<8x128xf32> to vector<8x128xbf16>
    %c2_26 = arith.constant 2 : index
    %c0_27 = arith.constant 0 : index
    %c0_28 = arith.constant 0 : index
    %57 = vector.load %arg3[%c2_26, %c0_27, %c0_28] : memref<4x128x128xbf16, #tpu.memory_space<vmem>>, vector<1x128x128xbf16>
    %58 = vector.shape_cast %57 : vector<1x128x128xbf16> to vector<128x128xbf16>
    %cst_29 = arith.constant dense<0.000000e+00> : vector<8x128xf32>
    %59 = tpu.matmul %56, %58, %cst_29 {dimension_numbers = #tpu.dot_dimension_numbers<[1], [0], [0], [1], [0, 0, 1, 1], [], []>} : vector<8x128xbf16>, vector<128x128xbf16>, vector<8x128xf32> -> vector<8x128xf32>
    %c5 = arith.constant 5 : index
    %c0_30 = arith.constant 0 : index
    %60 = vector.load %arg2[%c5, %c0_30] : memref<16x128xf32, #tpu.memory_space<vmem>>, vector<1x128xf32>
    %61 = vector.broadcast %60 : vector<1x128xf32> to vector<8x128xf32>
    %62 = arith.addf %59, %61 : vector<8x128xf32>
    %c6 = arith.constant 6 : index
    %c0_31 = arith.constant 0 : index
    %63 = vector.load %arg2[%c6, %c0_31] : memref<16x128xf32, #tpu.memory_space<vmem>>, vector<1x128xf32>
    %c7 = arith.constant 7 : index
    %c0_32 = arith.constant 0 : index
    %64 = vector.load %arg2[%c7, %c0_32] : memref<16x128xf32, #tpu.memory_space<vmem>>, vector<1x128xf32>
    %65 = arith.truncf %62 : vector<8x128xf32> to vector<8x128xbf16>
    %cst_33 = arith.constant dense<0.000000e+00> : vector<8x128xf32>
    %66 = tpu.matmul %65, %1, %cst_33 {dimension_numbers = #tpu.dot_dimension_numbers<[1], [0], [0], [1], [0, 0, 1, 1], [], []>} : vector<8x128xbf16>, vector<128x128xbf16>, vector<8x128xf32> -> vector<8x128xf32>
    %cst_34 = arith.constant 3.125000e-02 : f32
    %67 = vector.broadcast %cst_34 : f32 to vector<8x128xf32>
    %68 = arith.mulf %66, %67 : vector<8x128xf32>
    %69 = arith.subf %62, %68 : vector<8x128xf32>
    %70 = arith.mulf %69, %69 : vector<8x128xf32>
    %71 = arith.truncf %70 : vector<8x128xf32> to vector<8x128xbf16>
    %cst_35 = arith.constant dense<0.000000e+00> : vector<8x128xf32>
    %72 = tpu.matmul %71, %1, %cst_35 {dimension_numbers = #tpu.dot_dimension_numbers<[1], [0], [0], [1], [0, 0, 1, 1], [], []>} : vector<8x128xbf16>, vector<128x128xbf16>, vector<8x128xf32> -> vector<8x128xf32>
    %cst_36 = arith.constant 3.125000e-02 : f32
    %73 = vector.broadcast %cst_36 : f32 to vector<8x128xf32>
    %74 = arith.mulf %72, %73 : vector<8x128xf32>
    %cst_37 = arith.constant 0.000000e+00 : f32
    %75 = vector.broadcast %cst_37 : f32 to vector<8x128xf32>
    %76 = arith.maximumf %74, %75 : vector<8x128xf32>
    %cst_38 = arith.constant 9.99999974E-6 : f32
    %77 = vector.broadcast %cst_38 : f32 to vector<8x128xf32>
    %78 = arith.addf %76, %77 : vector<8x128xf32>
    %79 = math.rsqrt %78 : vector<8x128xf32>
    %80 = arith.mulf %69, %79 : vector<8x128xf32>
    %81 = vector.broadcast %63 : vector<1x128xf32> to vector<8x128xf32>
    %82 = arith.mulf %80, %81 : vector<8x128xf32>
    %83 = vector.broadcast %64 : vector<1x128xf32> to vector<8x128xf32>
    %84 = arith.addf %82, %83 : vector<8x128xf32>
    %cst_39 = arith.constant 0.000000e+00 : f32
    %85 = vector.broadcast %cst_39 : f32 to vector<8x128xf32>
    %86 = arith.maximumf %84, %85 : vector<8x128xf32>
    %87 = arith.truncf %86 : vector<8x128xf32> to vector<8x128xbf16>
    %c3_40 = arith.constant 3 : index
    %c0_41 = arith.constant 0 : index
    %c0_42 = arith.constant 0 : index
    %88 = vector.load %arg3[%c3_40, %c0_41, %c0_42] : memref<4x128x128xbf16, #tpu.memory_space<vmem>>, vector<1x128x128xbf16>
    %89 = vector.shape_cast %88 : vector<1x128x128xbf16> to vector<128x128xbf16>
    %cst_43 = arith.constant dense<0.000000e+00> : vector<8x128xf32>
    %90 = tpu.matmul %87, %89, %cst_43 {dimension_numbers = #tpu.dot_dimension_numbers<[1], [0], [0], [1], [0, 0, 1, 1], [], []>} : vector<8x128xbf16>, vector<128x128xbf16>, vector<8x128xf32> -> vector<8x128xf32>
    %c8 = arith.constant 8 : index
    %c0_44 = arith.constant 0 : index
    %91 = vector.load %arg2[%c8, %c0_44] : memref<16x128xf32, #tpu.memory_space<vmem>>, vector<1x128xf32>
    %92 = vector.broadcast %91 : vector<1x128xf32> to vector<8x128xf32>
    %93 = arith.addf %90, %92 : vector<8x128xf32>
    %c9 = arith.constant 9 : index
    %c0_45 = arith.constant 0 : index
    %94 = vector.load %arg2[%c9, %c0_45] : memref<16x128xf32, #tpu.memory_space<vmem>>, vector<1x128xf32>
    %c10 = arith.constant 10 : index
    %c0_46 = arith.constant 0 : index
    %95 = vector.load %arg2[%c10, %c0_46] : memref<16x128xf32, #tpu.memory_space<vmem>>, vector<1x128xf32>
    %96 = arith.truncf %93 : vector<8x128xf32> to vector<8x128xbf16>
    %cst_47 = arith.constant dense<0.000000e+00> : vector<8x128xf32>
    %97 = tpu.matmul %96, %1, %cst_47 {dimension_numbers = #tpu.dot_dimension_numbers<[1], [0], [0], [1], [0, 0, 1, 1], [], []>} : vector<8x128xbf16>, vector<128x128xbf16>, vector<8x128xf32> -> vector<8x128xf32>
    %cst_48 = arith.constant 3.125000e-02 : f32
    %98 = vector.broadcast %cst_48 : f32 to vector<8x128xf32>
    %99 = arith.mulf %97, %98 : vector<8x128xf32>
    %100 = arith.subf %93, %99 : vector<8x128xf32>
    %101 = arith.mulf %100, %100 : vector<8x128xf32>
    %102 = arith.truncf %101 : vector<8x128xf32> to vector<8x128xbf16>
    %cst_49 = arith.constant dense<0.000000e+00> : vector<8x128xf32>
    %103 = tpu.matmul %102, %1, %cst_49 {dimension_numbers = #tpu.dot_dimension_numbers<[1], [0], [0], [1], [0, 0, 1, 1], [], []>} : vector<8x128xbf16>, vector<128x128xbf16>, vector<8x128xf32> -> vector<8x128xf32>
    %cst_50 = arith.constant 3.125000e-02 : f32
    %104 = vector.broadcast %cst_50 : f32 to vector<8x128xf32>
    %105 = arith.mulf %103, %104 : vector<8x128xf32>
    %cst_51 = arith.constant 0.000000e+00 : f32
    %106 = vector.broadcast %cst_51 : f32 to vector<8x128xf32>
    %107 = arith.maximumf %105, %106 : vector<8x128xf32>
    %cst_52 = arith.constant 9.99999974E-6 : f32
    %108 = vector.broadcast %cst_52 : f32 to vector<8x128xf32>
    %109 = arith.addf %107, %108 : vector<8x128xf32>
    %110 = math.rsqrt %109 : vector<8x128xf32>
    %111 = arith.mulf %100, %110 : vector<8x128xf32>
    %112 = vector.broadcast %94 : vector<1x128xf32> to vector<8x128xf32>
    %113 = arith.mulf %111, %112 : vector<8x128xf32>
    %114 = vector.broadcast %95 : vector<1x128xf32> to vector<8x128xf32>
    %115 = arith.addf %113, %114 : vector<8x128xf32>
    %cst_53 = arith.constant 0.000000e+00 : f32
    %116 = vector.broadcast %cst_53 : f32 to vector<8x128xf32>
    %117 = arith.maximumf %115, %116 : vector<8x128xf32>
    %118 = arith.truncf %117 : vector<8x128xf32> to vector<8x128xbf16>
    %c0_54 = arith.constant 0 : index
    %c0_55 = arith.constant 0 : index
    %119 = vector.load %arg4[%c0_54, %c0_55] : memref<128x4xbf16, #tpu.memory_space<vmem>>, vector<128x4xbf16>
    %cst_56 = arith.constant dense<0.000000e+00> : vector<8x4xf32>
    %120 = tpu.matmul %118, %119, %cst_56 {dimension_numbers = #tpu.dot_dimension_numbers<[1], [0], [0], [1], [0, 0, 1, 1], [], []>} : vector<8x128xbf16>, vector<128x4xbf16>, vector<8x4xf32> -> vector<8x4xf32>
    %c11 = arith.constant 11 : index
    %c0_57 = arith.constant 0 : index
    %121 = vector.load %arg2[%c11, %c0_57] : memref<16x128xf32, #tpu.memory_space<vmem>>, vector<1x128xf32>
    %122 = vector.extract_strided_slice %121 {offsets = [0, 0], sizes = [1, 4], strides = [1, 1]} : vector<1x128xf32> to vector<1x4xf32>
    %123 = vector.broadcast %122 : vector<1x4xf32> to vector<8x4xf32>
    %124 = arith.addf %120, %123 : vector<8x4xf32>
    %c0_58 = arith.constant 0 : index
    %c0_59 = arith.constant 0 : index
    %125 = vector.load %arg5[%c0_58, %c0_59] : memref<8x4xf32, #tpu.memory_space<vmem>>, vector<8x4xf32>
    tpu.vector_store %arg5[%c0_58, %c0_59], %124 {strides = array<i32>} : memref<8x4xf32, #tpu.memory_space<vmem>>, vector<8x4xf32>,
    return
  }
  func.func @transform_0(%arg0: i32) -> (i32, i32) {
    %c0_i32 = arith.constant 0 : i32
    %c0_i32_0 = arith.constant 0 : i32
    return %arg0, %c0_i32 : i32, i32
  }
  func.func @transform_1(%arg0: i32) -> (i32, i32) {
    %c0_i32 = arith.constant 0 : i32
    %c0_i32_0 = arith.constant 0 : i32
    %c0_i32_1 = arith.constant 0 : i32
    return %c0_i32, %c0_i32_0 : i32, i32
  }
  func.func @transform_2(%arg0: i32) -> (i32, i32, i32) {
    %c0_i32 = arith.constant 0 : i32
    %c0_i32_0 = arith.constant 0 : i32
    %c0_i32_1 = arith.constant 0 : i32
    %c0_i32_2 = arith.constant 0 : i32
    return %c0_i32, %c0_i32_0, %c0_i32_1 : i32, i32, i32
  }
  func.func @transform_3(%arg0: i32) -> (i32, i32) {
    %c0_i32 = arith.constant 0 : i32
    %c0_i32_0 = arith.constant 0 : i32
    %c0_i32_1 = arith.constant 0 : i32
    return %c0_i32, %c0_i32_0 : i32, i32
  }
  func.func @transform_4(%arg0: i32) -> (i32, i32) {
    %c0_i32 = arith.constant 0 : i32
    %c0_i32_0 = arith.constant 0 : i32
    return %arg0, %c0_i32 : i32, i32
  }
}

</mosaic_0001>

<bundles_post_ra>
// kernel: tpu_custom_call.1
= control target key start
LH: loop header
LB: loop body
LE: loop exit
PB: predicated region body
PF: predicated region fallthrough
CT: control target
= control target key end

     0   :  { %9 = vsyncpa [#allocation3], 0  ;;  %s1797_s0 = inlined_call_operand.vmem [shape: f32[4,128], index: 0, kind: input, shape index: {}]   ;;  %s1798_s1 = inlined_call_operand.vmem [shape: f32[16,128], index: 1, kind: input, shape index: {}]   ;;  %s1799_s2 = inlined_call_operand.hbm [shape: bf16[4,128,128], index: 2, kind: input, shape index: {}]   ;;  %s1800_s3 = inlined_call_operand.vmem [shape: bf16[128,4], index: 3, kind: input, shape index: {}]   ;;  %s1801_s4 = inlined_call_operand.hbm [shape: f32[4,4], index: 4, kind: output, shape index: {}]  }
   0x1   :  { %10 = vsyncpa [#allocation4], 0  ;;  %s1473_s15 = smov [#allocation2]   ;;  %s1425_s19 = scalar_lea.hbm %s1799_s2, 4096 }
   0x2   :  { %s20_s16 = sshll.u32 %s1473_s15, 4  ;;  %p1426_p0 = scmp.ne.s32.totalorder %s1799_s2, %s1425_s19  ;;  %s21_s16 = int_to_ptr.vmem [resolvable:$true] %s20_s16 }
   0x3   :  { %p1429_p1 = scmp.lt.u32.totalorder %s1425_s19, %s1799_s2 }
   0x5   :  { %p1431_p2 = pnand %p1429_p1, %p1426_p0 }
   0x7   :  { %1434 = shalt.err (!%p1431_p2)
}
   0x8   :  { %s1435_s24 = scalar_lea.vmem %s21_s16, 4096  ;;  %p1440_p4 = scmp.lt.s32.totalorder %s21_s16, %s21_s16 }
   0x9   :  { %p1436_p3 = scmp.ne.s32.totalorder %s21_s16, %s1435_s24  ;;  %p1441_p5 = scmp.lt.s32.totalorder %s1435_s24, %s1435_s24 }
   0xb   :  { %p1442_p6 = por %p1441_p5, %p1440_p4 }
   0xd   :  { %p1443_p7 = pnand %p1442_p6, %p1436_p3 }
   0xf   :  { %1446 = shalt.err (!%p1443_p7)
}
  0x10   :  { %s1474_s25 = smov 64   ;;  %s1475_s26 = smov 4  }
  0x11   :  { %26 = dma.hbm_to_vmem [thread:$0]  %s1799_s2, 4096, %s21_s16, [#allocation3], %s1474_s25, %s1474_s25, %s1475_s26  }
  0x12   :  { %1469 = dma.done.wait [#allocation3], 4096  }
  0x13   :  { %1470 = vsyncadd [#allocation3], 4294963200  ;;  %v1476_v0 = vmov 0.0   ;;  %vm1477_vm0 = vmmov 0   ;;  %v1525_v1 = vld [vmem:[#allocation2] sm:$0xff]   ;;  %v1528_v2 = vld [vmem:[#allocation2 + $0x8] sm:$0xff]  }
  0x14   :  { %1131 = vmatprep.subr.bf16.mxu0 %v1476_v0  ;;  %1147 = vmatprep.mubr.msk.bf16.mxu0 %vm1477_vm0, %v1476_v0  ;;  %v1534_v3 = vld [vmem:[#allocation2 + $0x10] sm:$0xff]   ;;  %v1539_v4 = vld [vmem:[#allocation2 + $0x18] sm:$0xff]   ;;  %v1545_v5 = vld [vmem:[#allocation2 + $0x20] sm:$0xff]   ;;  %vm952_vm1 = vcmask 31744  }
  0x15   :  { %1151 = vmatprep.subr.bf16.mxu1 %v1476_v0  ;;  %1167 = vmatprep.mubr.msk.bf16.mxu1 %vm1477_vm0, %v1476_v0  ;;  %v1551_v6 = vld [vmem:[#allocation2 + $0x28] sm:$0xff]   ;;  %v1557_v7 = vld [vmem:[#allocation2 + $0x30] sm:$0xff]   ;;  %v1563_v8 = vld [vmem:[#allocation2 + $0x38] sm:$0xff]  }
  0x16   :  { %1132 = vmatpush3.bf16.msra.mxu0 %v1525_v1  ;;  %1152 = vmatpush3.bf16.msra.mxu1 %v1525_v1  ;;  %v49_v9 = vld [vmem:[%s1797_s0] sm:$0xff]  ;;  %v1386_v12 = vld [vmem:[#allocation2 + $0x48] sm:$0xff]   ;;  %v1387_v21 = vld [vmem:[#allocation2 + $0x50] sm:$0xff]  }
  0x17   :  { %1133 = vmatprep.subr.bf16.mxu0 %v1476_v0  ;;  %1153 = vmatprep.subr.bf16.mxu1 %v1476_v0  ;;  %v52_v10 = vpack.c.bf16 %v49_v9, %v49_v9  ;;  %v1385_v11 = vld [vmem:[#allocation2 + $0x40] sm:$0xff]   ;;  %v1388_v22 = vld [vmem:[#allocation2 + $0x58] sm:$0xff]   ;;  %v1390_v24 = vld [vmem:[#allocation2 + $0x68] sm:$0xff]  }
  0x18   :  { %v1389_v23 = vld [vmem:[#allocation2 + $0x60] sm:$0xff]   ;;  %v1391_v25 = vld [vmem:[#allocation2 + $0x70] sm:$0xff]   ;;  %v1392_v26 = vld [vmem:[#allocation2 + $0x78] sm:$0xff]  }
  0x19   :  { %v979_v35 = vld [vmem:[%s1798_s1] ss:$0 sm:$0xff]  ;;  %v980_v37 = vld [vmem:[%s1798_s1 + $0x1] ss:$0 sm:$0xff]  ;;  %v981_v41 = vld [vmem:[%s1798_s1 + $0x2] ss:$0 sm:$0xff] }
  0x1a   :  { %1134 = vmatpush3.bf16.msra.mxu0 %v1528_v2  ;;  %1154 = vmatpush3.bf16.msra.mxu1 %v1528_v2  ;;  %v1393_v48 = vld [vmem:[#allocation2 + $0x80] sm:$0xff]   ;;  %v1394_v57 = vld [vmem:[#allocation2 + $0x88] sm:$0xff]   ;;  %v1395_v58 = vld [vmem:[#allocation2 + $0x90] sm:$0xff]  }
  0x1b   :  { %1135 = vmatprep.subr.bf16.mxu0 %v1476_v0  ;;  %1155 = vmatprep.subr.bf16.mxu1 %v1476_v0  ;;  %v1396_v59 = vld [vmem:[#allocation2 + $0x98] sm:$0xff]   ;;  %v1397_v60 = vld [vmem:[#allocation2 + $0xa0] sm:$0xff]   ;;  %v1398_v61 = vld [vmem:[#allocation2 + $0xa8] sm:$0xff]  }
  0x1c   :  { %v1399_v62 = vld [vmem:[#allocation2 + $0xb0] sm:$0xff]   ;;  %v1400_v63 = vld [vmem:[#allocation2 + $0xb8] sm:$0xff]  }
  0x1e   :  { %1136 = vmatpush3.bf16.msra.mxu0 %v1534_v3  ;;  %1156 = vmatpush3.bf16.msra.mxu1 %v1534_v3 }
  0x1f   :  { %1137 = vmatprep.subr.bf16.mxu0 %v1476_v0  ;;  %1157 = vmatprep.subr.bf16.mxu1 %v1476_v0 }
  0x22   :  { %1138 = vmatpush3.bf16.msra.mxu0 %v1539_v4  ;;  %1158 = vmatpush3.bf16.msra.mxu1 %v1539_v4 }
  0x23   :  { %1139 = vmatprep.subr.bf16.mxu0 %v1476_v0  ;;  %1159 = vmatprep.subr.bf16.mxu1 %v1476_v0 }
  0x26   :  { %1140 = vmatpush3.bf16.msra.mxu0 %v1545_v5  ;;  %1160 = vmatpush3.bf16.msra.mxu1 %v1545_v5 }
  0x27   :  { %1141 = vmatprep.subr.bf16.mxu0 %v1476_v0  ;;  %1161 = vmatprep.subr.bf16.mxu1 %v1476_v0 }
  0x2a   :  { %1142 = vmatpush3.bf16.msra.mxu0 %v1551_v6  ;;  %1162 = vmatpush3.bf16.msra.mxu1 %v1551_v6 }
  0x2b   :  { %1143 = vmatprep.subr.bf16.mxu0 %v1476_v0  ;;  %1163 = vmatprep.subr.bf16.mxu1 %v1476_v0 }
  0x2e   :  { %1144 = vmatpush3.bf16.msra.mxu0 %v1557_v7  ;;  %1164 = vmatpush3.bf16.msra.mxu1 %v1557_v7 }
  0x2f   :  { %1145 = vmatprep.subr.bf16.mxu0 %v1476_v0  ;;  %1165 = vmatprep.subr.bf16.mxu1 %v1476_v0 }
  0x32   :  { %1146 = vmatpush3.bf16.msra.mxu0 %v1563_v8  ;;  %1166 = vmatpush3.bf16.msra.mxu1 %v1563_v8 }
  0x33   :  { %1171 = vmatprep.subr.bf16.mxu0 %v1476_v0  ;;  %1191 = vmatprep.subr.bf16.mxu1 %v1476_v0 }
  0x35   :  { %1148 = vmatmul.mubr.bf16.vlgmr.msra.gmra.mrb[0].mxu0 %v52_v10 }
  0x36   :  { %1187 = vmatprep.mubr.msk.bf16.mxu0 %vm1477_vm0, %v1476_v0  ;;  %1172 = vmatpush3.bf16.msra.mxu0 %v1385_v11 }
  0x37   :  { %1173 = vmatprep.subr.bf16.mxu0 %v1476_v0 }
  0x3a   :  { %1174 = vmatpush3.bf16.msra.mxu0 %v1386_v12 }
  0x3b   :  { %1175 = vmatprep.subr.bf16.mxu0 %v1476_v0 }
  0x3e   :  { %1176 = vmatpush3.bf16.msra.mxu0 %v1387_v21 }
  0x3f   :  { %1177 = vmatprep.subr.bf16.mxu0 %v1476_v0 }
  0x42   :  { %1178 = vmatpush3.bf16.msra.mxu0 %v1388_v22 }
  0x43   :  { %1179 = vmatprep.subr.bf16.mxu0 %v1476_v0 }
  0x46   :  { %1180 = vmatpush3.bf16.msra.mxu0 %v1389_v23 }
  0x47   :  { %1181 = vmatprep.subr.bf16.mxu0 %v1476_v0 }
  0x4a   :  { %1182 = vmatpush3.bf16.msra.mxu0 %v1390_v24  ;;  %v992_v24 = vld [vmem:[%s1798_s1 + $0x5] ss:$0 sm:$0xff] }
  0x4b   :  { %1183 = vmatprep.subr.bf16.mxu0 %v1476_v0 }
  0x4e   :  { %1184 = vmatpush3.bf16.msra.mxu0 %v1391_v25 }
  0x4f   :  { %1185 = vmatprep.subr.bf16.mxu0 %v1476_v0 }
  0x52   :  { %1186 = vmatpush3.bf16.msra.mxu0 %v1392_v26 }
  0x53   :  { %1211 = vmatprep.subr.bf16.mxu0 %v1476_v0 }
 0x108   :  { %v135_v13 = vpop.f32.mrb[0].mxu0 }
 0x109   :  { %v141_v14 = vmul.f32 0.03125, %v135_v13  ;;  %v1149_v15 = vpop.f32.mrb[1].mxu0 }
 0x10a   :  { %v138_v16 = vpop.f32.mrb[2].mxu0 }
 0x10b   :  { %v142_v17 = vsub.f32 %v49_v9, %v141_v14  ;;  %v1150_v18 = vpop.f32.mrb[3].mxu0 }
 0x10d   :  { %v143_v19 = vmul.f32 %v142_v17, %v142_v17 }
 0x10f   :  { %v144_v20 = vpack.c.bf16 %v143_v19, %v143_v19  ;;  %v991_v19 = vld [vmem:[%s1798_s1 + $0x4] ss:$0 sm:$0xff] }
 0x111   :  { %1168 = vmatmul.mubr.bf16.vlgmr.msra.gmra.mrb[0].mxu1 %v144_v20 }
 0x112   :  { %1192 = vmatpush3.bf16.msra.mxu1 %v1525_v1  ;;  %1207 = vmatprep.mubr.msk.bf16.mxu1 %vm1477_vm0, %v1476_v0 }
 0x113   :  { %1193 = vmatprep.subr.bf16.mxu1 %v1476_v0 }
 0x116   :  { %1194 = vmatpush3.bf16.msra.mxu1 %v1528_v2 }
 0x117   :  { %1195 = vmatprep.subr.bf16.mxu1 %v1476_v0 }
 0x11a   :  { %1196 = vmatpush3.bf16.msra.mxu1 %v1534_v3 }
 0x11b   :  { %1197 = vmatprep.subr.bf16.mxu1 %v1476_v0 }
 0x11e   :  { %1198 = vmatpush3.bf16.msra.mxu1 %v1539_v4 }
 0x11f   :  { %1199 = vmatprep.subr.bf16.mxu1 %v1476_v0 }
 0x122   :  { %1200 = vmatpush3.bf16.msra.mxu1 %v1545_v5 }
 0x123   :  { %1201 = vmatprep.subr.bf16.mxu1 %v1476_v0 }
 0x126   :  { %1202 = vmatpush3.bf16.msra.mxu1 %v1551_v6 }
 0x127   :  { %1203 = vmatprep.subr.bf16.mxu1 %v1476_v0 }
 0x12a   :  { %1204 = vmatpush3.bf16.msra.mxu1 %v1557_v7 }
 0x12b   :  { %1205 = vmatprep.subr.bf16.mxu1 %v1476_v0 }
 0x12e   :  { %1206 = vmatpush3.bf16.msra.mxu1 %v1563_v8 }
 0x12f   :  { %1231 = vmatprep.subr.bf16.mxu1 %v1476_v0 }
 0x1e4   :  { %v179_v27 = vpop.f32.mrb[0].mxu1 }
 0x1e5   :  { %v185_v28 = vmul.f32 0.03125, %v179_v27  ;;  %v1169_v29 = vpop.f32.mrb[1].mxu1 }
 0x1e6   :  { %v182_v30 = vpop.f32.mrb[2].mxu1 }
 0x1e7   :  { %v186_v31 = vmax.f32 %v185_v28, 0.0  ;;  %v1170_v32 = vpop.f32.mrb[3].mxu1 }
 0x1e9   :  { %v187_v33 = vadd.f32 1e-05, %v186_v31  ;;  %v1401_v31 = vld [vmem:[#allocation2 + $0xc0] sm:$0xff]  }
 0x1eb   :  { %1417 = vrsqrt.f32 %v187_v33 }
 0x1f5   :  { %v1418_v34 = vpop.eup %1417 }
 0x1f6   :  { %v189_v36 = vmul.f32 %v1418_v34, %v142_v17  ;;  %v990_v17 = vld [vmem:[%s1798_s1 + $0x3] ss:$0 sm:$0xff] }
 0x1f8   :  { %v194_v38 = vmul.f32 %v979_v35, %v189_v36 }
 0x1fa   :  { %v199_v39 = vadd.f32 %v980_v37, %v194_v38 }
 0x1fc   :  { %v200_v40 = vpack.c.bf16 %v199_v39, %v199_v39 }
 0x1fe   :  { %1188 = vmatmul.mubr.bf16.vlgmr.msra.gmra.mrb[4].mxu0 %v200_v40  ;;  %v1402_v40 = vld [vmem:[#allocation2 + $0xc8] sm:$0xff]  }
 0x1ff   :  { %1212 = vmatpush3.bf16.msra.mxu0 %v1525_v1  ;;  %1227 = vmatprep.mubr.msk.bf16.mxu0 %vm1477_vm0, %v1476_v0 }
 0x200   :  { %1213 = vmatprep.subr.bf16.mxu0 %v1476_v0 }
 0x203   :  { %1214 = vmatpush3.bf16.msra.mxu0 %v1528_v2 }
 0x204   :  { %1215 = vmatprep.subr.bf16.mxu0 %v1476_v0 }
 0x207   :  { %1216 = vmatpush3.bf16.msra.mxu0 %v1534_v3 }
 0x208   :  { %1217 = vmatprep.subr.bf16.mxu0 %v1476_v0 }
 0x20b   :  { %1218 = vmatpush3.bf16.msra.mxu0 %v1539_v4 }
 0x20c   :  { %1219 = vmatprep.subr.bf16.mxu0 %v1476_v0 }
 0x20f   :  { %1220 = vmatpush3.bf16.msra.mxu0 %v1545_v5 }
 0x210   :  { %1221 = vmatprep.subr.bf16.mxu0 %v1476_v0 }
 0x213   :  { %1222 = vmatpush3.bf16.msra.mxu0 %v1551_v6 }
 0x214   :  { %1223 = vmatprep.subr.bf16.mxu0 %v1476_v0 }
 0x217   :  { %1224 = vmatpush3.bf16.msra.mxu0 %v1557_v7 }
 0x218   :  { %1225 = vmatprep.subr.bf16.mxu0 %v1476_v0 }
 0x21b   :  { %1226 = vmatpush3.bf16.msra.mxu0 %v1563_v8 }
 0x21c   :  { %1251 = vmatprep.subr.bf16.mxu0 %v1476_v0 }
 0x2d1   :  { %v305_v42 = vpop.f32.mrb[4].mxu0 }
 0x2d2   :  { %v306_v43 = vadd.f32 %v981_v41, %v305_v42  ;;  %v1189_v44 = vpop.f32.mrb[5].mxu0  ;;  %v1403_v41 = vld [vmem:[#allocation2 + $0xd0] sm:$0xff]   ;;  %v1404_v42 = vld [vmem:[#allocation2 + $0xd8] sm:$0xff]  }
 0x2d3   :  { %v308_v45 = vpop.f32.mrb[6].mxu0  ;;  %v1406_v44 = vld [vmem:[#allocation2 + $0xe8] sm:$0xff]  }
 0x2d4   :  { %v313_v46 = vpack.c.bf16 %v306_v43, %v306_v43  ;;  %v1190_v47 = vpop.f32.mrb[7].mxu0  ;;  %v1407_v45 = vld [vmem:[#allocation2 + $0xf0] sm:$0xff]  }
 0x2d6   :  { %1208 = vmatmul.mubr.bf16.vlgmr.msra.gmra.mrb[4].mxu1 %v313_v46  ;;  %v1408_v46 = vld [vmem:[#allocation2 + $0xf8] sm:$0xff]  }
 0x2d7   :  { %1247 = vmatprep.mubr.msk.bf16.mxu1 %vm1477_vm0, %v1476_v0  ;;  %1232 = vmatpush3.bf16.msra.mxu1 %v1393_v48 }
 0x2d8   :  { %1233 = vmatprep.subr.bf16.mxu1 %v1476_v0 }
 0x2db   :  { %1234 = vmatpush3.bf16.msra.mxu1 %v1394_v57  ;;  %v1002_v57 = vld [vmem:[%s1798_s1 + $0x7] ss:$0 sm:$0xff] }
 0x2dc   :  { %1235 = vmatprep.subr.bf16.mxu1 %v1476_v0 }
 0x2df   :  { %1236 = vmatpush3.bf16.msra.mxu1 %v1395_v58 }
 0x2e0   :  { %1237 = vmatprep.subr.bf16.mxu1 %v1476_v0 }
 0x2e3   :  { %1238 = vmatpush3.bf16.msra.mxu1 %v1396_v59 }
 0x2e4   :  { %1239 = vmatprep.subr.bf16.mxu1 %v1476_v0 }
 0x2e7   :  { %1240 = vmatpush3.bf16.msra.mxu1 %v1397_v60 }
 0x2e8   :  { %1241 = vmatprep.subr.bf16.mxu1 %v1476_v0 }
 0x2eb   :  { %1242 = vmatpush3.bf16.msra.mxu1 %v1398_v61 }
 0x2ec   :  { %1243 = vmatprep.subr.bf16.mxu1 %v1476_v0 }
 0x2ef   :  { %1244 = vmatpush3.bf16.msra.mxu1 %v1399_v62 }
 0x2f0   :  { %1245 = vmatprep.subr.bf16.mxu1 %v1476_v0 }
 0x2f3   :  { %1246 = vmatpush3.bf16.msra.mxu1 %v1400_v63 }
 0x2f4   :  { %1271 = vmatprep.subr.bf16.mxu1 %v1476_v0 }
 0x3a9   :  { %v348_v49 = vpop.f32.mrb[4].mxu1 }
 0x3aa   :  { %v354_v50 = vmul.f32 0.03125, %v348_v49  ;;  %v1209_v51 = vpop.f32.mrb[5].mxu1 }
 0x3ab   :  { %v351_v52 = vpop.f32.mrb[6].mxu1 }
 0x3ac   :  { %v355_v53 = vsub.f32 %v306_v43, %v354_v50  ;;  %v1210_v54 = vpop.f32.mrb[7].mxu1  ;;  %v1405_v43 = vld [vmem:[#allocation2 + $0xe0] sm:$0xff]  }
 0x3ae   :  { %v356_v55 = vmul.f32 %v355_v53, %v355_v53 }
 0x3b0   :  { %v357_v56 = vpack.c.bf16 %v356_v55, %v356_v55  ;;  %v1001_v55 = vld [vmem:[%s1798_s1 + $0x6] ss:$0 sm:$0xff] }
 0x3b2   :  { %1228 = vmatmul.mubr.bf16.vlgmr.msra.gmra.mrb[8].mxu0 %v357_v56 }
 0x3b3   :  { %1252 = vmatpush3.bf16.msra.mxu0 %v1525_v1  ;;  %1267 = vmatprep.mubr.msk.bf16.mxu0 %vm1477_vm0, %v1476_v0 }
 0x3b4   :  { %1253 = vmatprep.subr.bf16.mxu0 %v1476_v0 }
 0x3b7   :  { %1254 = vmatpush3.bf16.msra.mxu0 %v1528_v2 }
 0x3b8   :  { %1255 = vmatprep.subr.bf16.mxu0 %v1476_v0 }
 0x3bb   :  { %1256 = vmatpush3.bf16.msra.mxu0 %v1534_v3 }
 0x3bc   :  { %1257 = vmatprep.subr.bf16.mxu0 %v1476_v0 }
 0x3bf   :  { %1258 = vmatpush3.bf16.msra.mxu0 %v1539_v4 }
 0x3c0   :  { %1259 = vmatprep.subr.bf16.mxu0 %v1476_v0 }
 0x3c3   :  { %1260 = vmatpush3.bf16.msra.mxu0 %v1545_v5 }
 0x3c4   :  { %1261 = vmatprep.subr.bf16.mxu0 %v1476_v0 }
 0x3c7   :  { %1262 = vmatpush3.bf16.msra.mxu0 %v1551_v6 }
 0x3c8   :  { %1263 = vmatprep.subr.bf16.mxu0 %v1476_v0 }
 0x3cb   :  { %1264 = vmatpush3.bf16.msra.mxu0 %v1557_v7 }
 0x3cc   :  { %1265 = vmatprep.subr.bf16.mxu0 %v1476_v0 }
 0x3cf   :  { %1266 = vmatpush3.bf16.msra.mxu0 %v1563_v8 }
 0x3d0   :  { %1291 = vmatprep.subr.bf16.mxu0 %v1476_v0 }
 0x485   :  { %v392_v9 = vpop.f32.mrb[8].mxu0 }
 0x486   :  { %v398_v10 = vmul.f32 0.03125, %v392_v9  ;;  %v1229_v11 = vpop.f32.mrb[9].mxu0 }
 0x487   :  { %v395_v12 = vpop.f32.mrb[10].mxu0 }
 0x488   :  { %v399_v13 = vmax.f32 %v398_v10, 0.0  ;;  %v1230_v14 = vpop.f32.mrb[11].mxu0 }
 0x48a   :  { %v400_v15 = vadd.f32 1e-05, %v399_v13 }
 0x48c   :  { %1419 = vrsqrt.f32 %v400_v15  ;;  %v1410_v15 = vld [vmem:[%s1800_s3 + $0x8] sm:$0xff]  }
 0x496   :  { %v1420_v16 = vpop.eup %1419 }
 0x497   :  { %v402_v18 = vmul.f32 %v1420_v16, %v355_v53  ;;  %v1411_v16 = vld [vmem:[%s1800_s3 + $0x10] sm:$0xff]  }
 0x499   :  { %v407_v20 = vmul.f32 %v990_v17, %v402_v18  ;;  %v1412_v17 = vld [vmem:[%s1800_s3 + $0x18] sm:$0xff]   ;;  %v1413_v18 = vld [vmem:[%s1800_s3 + $0x20] sm:$0xff]  }
 0x49b   :  { %v412_v21 = vadd.f32 %v991_v19, %v407_v20  ;;  %v1414_v19 = vld [vmem:[%s1800_s3 + $0x28] sm:$0xff]   ;;  %v1415_v20 = vld [vmem:[%s1800_s3 + $0x30] sm:$0xff]  }
 0x49d   :  { %v413_v22 = vmax.f32 %v412_v21, 0.0  ;;  %v1416_v21 = vld [vmem:[%s1800_s3 + $0x38] sm:$0xff]  }
 0x49f   :  { %v414_v23 = vpack.c.bf16 %v413_v22, %v413_v22 }
 0x4a1   :  { %1248 = vmatmul.mubr.bf16.vlgmr.msra.gmra.mrb[8].mxu1 %v414_v23 }
 0x4a2   :  { %1272 = vmatpush3.bf16.msra.mxu1 %v1525_v1  ;;  %1287 = vmatprep.mubr.msk.bf16.mxu1 %vm1477_vm0, %v1476_v0 }
 0x4a3   :  { %1273 = vmatprep.subr.bf16.mxu1 %v1476_v0 }
 0x4a6   :  { %1274 = vmatpush3.bf16.msra.mxu1 %v1528_v2 }
 0x4a7   :  { %1275 = vmatprep.subr.bf16.mxu1 %v1476_v0 }
 0x4aa   :  { %1276 = vmatpush3.bf16.msra.mxu1 %v1534_v3 }
 0x4ab   :  { %1277 = vmatprep.subr.bf16.mxu1 %v1476_v0 }
 0x4ae   :  { %1278 = vmatpush3.bf16.msra.mxu1 %v1539_v4 }
 0x4af   :  { %1279 = vmatprep.subr.bf16.mxu1 %v1476_v0 }
 0x4b2   :  { %1280 = vmatpush3.bf16.msra.mxu1 %v1545_v5 }
 0x4b3   :  { %1281 = vmatprep.subr.bf16.mxu1 %v1476_v0 }
 0x4b6   :  { %1282 = vmatpush3.bf16.msra.mxu1 %v1551_v6 }
 0x4b7   :  { %1283 = vmatprep.subr.bf16.mxu1 %v1476_v0 }
 0x4ba   :  { %1284 = vmatpush3.bf16.msra.mxu1 %v1557_v7 }
 0x4bb   :  { %1285 = vmatprep.subr.bf16.mxu1 %v1476_v0 }
 0x4be   :  { %1286 = vmatpush3.bf16.msra.mxu1 %v1563_v8 }
 0x4bf   :  { %1311 = vmatprep.subr.bf16.mxu1 %v1476_v0 }
 0x574   :  { %v519_v25 = vpop.f32.mrb[8].mxu1 }
 0x575   :  { %v520_v26 = vadd.f32 %v992_v24, %v519_v25  ;;  %v1249_v27 = vpop.f32.mrb[9].mxu1 }
 0x576   :  { %v522_v28 = vpop.f32.mrb[10].mxu1 }
 0x577   :  { %v527_v29 = vpack.c.bf16 %v520_v26, %v520_v26  ;;  %v1250_v30 = vpop.f32.mrb[11].mxu1 }
 0x578   :  { %v1012_v30 = vld [vmem:[%s1798_s1 + $0x9] ss:$0 sm:$0xff] }
 0x579   :  { %1268 = vmatmul.mubr.bf16.vlgmr.msra.gmra.mrb[12].mxu0 %v527_v29 }
 0x57a   :  { %1307 = vmatprep.mubr.msk.bf16.mxu0 %vm1477_vm0, %v1476_v0  ;;  %1292 = vmatpush3.bf16.msra.mxu0 %v1401_v31 }
 0x57b   :  { %1293 = vmatprep.subr.bf16.mxu0 %v1476_v0 }
 0x57e   :  { %1294 = vmatpush3.bf16.msra.mxu0 %v1402_v40 }
 0x57f   :  { %1295 = vmatprep.subr.bf16.mxu0 %v1476_v0 }
 0x582   :  { %1296 = vmatpush3.bf16.msra.mxu0 %v1403_v41 }
 0x583   :  { %1297 = vmatprep.subr.bf16.mxu0 %v1476_v0 }
 0x586   :  { %1298 = vmatpush3.bf16.msra.mxu0 %v1404_v42 }
 0x587   :  { %1299 = vmatprep.subr.bf16.mxu0 %v1476_v0 }
 0x58a   :  { %1300 = vmatpush3.bf16.msra.mxu0 %v1405_v43 }
 0x58b   :  { %1301 = vmatprep.subr.bf16.mxu0 %v1476_v0 }
 0x58e   :  { %1302 = vmatpush3.bf16.msra.mxu0 %v1406_v44 }
 0x58f   :  { %1303 = vmatprep.subr.bf16.mxu0 %v1476_v0 }
 0x592   :  { %1304 = vmatpush3.bf16.msra.mxu0 %v1407_v45 }
 0x593   :  { %1305 = vmatprep.subr.bf16.mxu0 %v1476_v0 }
 0x596   :  { %1306 = vmatpush3.bf16.msra.mxu0 %v1408_v46 }
 0x597   :  { %1331 = vmatprep.subr.bf16.mxu0 %v1476_v0 }
 0x64c   :  { %v562_v32 = vpop.f32.mrb[12].mxu0 }
 0x64d   :  { %v568_v33 = vmul.f32 0.03125, %v562_v32  ;;  %v1269_v34 = vpop.f32.mrb[13].mxu0  ;;  %v1013_v32 = vld [vmem:[%s1798_s1 + $0xa] ss:$0 sm:$0xff] }
 0x64e   :  { %v565_v35 = vpop.f32.mrb[14].mxu0 }
 0x64f   :  { %v569_v36 = vsub.f32 %v520_v26, %v568_v33  ;;  %v1270_v37 = vpop.f32.mrb[15].mxu0 }
 0x651   :  { %v570_v38 = vmul.f32 %v569_v36, %v569_v36 }
 0x653   :  { %v571_v39 = vpack.c.bf16 %v570_v38, %v570_v38 }
 0x655   :  { %1288 = vmatmul.mubr.bf16.vlgmr.msra.gmra.mrb[12].mxu1 %v571_v39 }
 0x656   :  { %1312 = vmatpush3.bf16.msra.mxu1 %v1525_v1  ;;  %1327 = vmatprep.mubr.msk.bf16.mxu1 %vm1477_vm0, %v1476_v0 }
 0x657   :  { %1313 = vmatprep.subr.bf16.mxu1 %v1476_v0 }
 0x65a   :  { %1314 = vmatpush3.bf16.msra.mxu1 %v1528_v2 }
 0x65b   :  { %1315 = vmatprep.subr.bf16.mxu1 %v1476_v0 }
 0x65e   :  { %1316 = vmatpush3.bf16.msra.mxu1 %v1534_v3 }
 0x65f   :  { %1317 = vmatprep.subr.bf16.mxu1 %v1476_v0 }
 0x662   :  { %1318 = vmatpush3.bf16.msra.mxu1 %v1539_v4 }
 0x663   :  { %1319 = vmatprep.subr.bf16.mxu1 %v1476_v0 }
 0x666   :  { %1320 = vmatpush3.bf16.msra.mxu1 %v1545_v5 }
 0x667   :  { %1321 = vmatprep.subr.bf16.mxu1 %v1476_v0 }
 0x66a   :  { %1322 = vmatpush3.bf16.msra.mxu1 %v1551_v6 }
 0x66b   :  { %1323 = vmatprep.subr.bf16.mxu1 %v1476_v0 }
 0x66e   :  { %1324 = vmatpush3.bf16.msra.mxu1 %v1557_v7 }
 0x66f   :  { %1325 = vmatprep.subr.bf16.mxu1 %v1476_v0 }
 0x672   :  { %1326 = vmatpush3.bf16.msra.mxu1 %v1563_v8 }
 0x673   :  { %1351 = vmatprep.subr.bf16.mxu1 %v1476_v0 }
 0x728   :  { %v606_v47 = vpop.f32.mrb[12].mxu1 }
 0x729   :  { %v612_v48 = vmul.f32 0.03125, %v606_v47  ;;  %v1289_v49 = vpop.f32.mrb[13].mxu1 }
 0x72a   :  { %v609_v50 = vpop.f32.mrb[14].mxu1 }
 0x72b   :  { %v613_v51 = vmax.f32 %v612_v48, 0.0  ;;  %v1290_v52 = vpop.f32.mrb[15].mxu1 }
 0x72d   :  { %v614_v53 = vadd.f32 1e-05, %v613_v51 }
 0x72f   :  { %1421 = vrsqrt.f32 %v614_v53 }
 0x739   :  { %v1422_v54 = vpop.eup %1421 }
 0x73a   :  { %v616_v56 = vmul.f32 %v1422_v54, %v569_v36  ;;  %v1014_v36 = vld [vmem:[%s1798_s1 + $0xb] ss:$0 sm:$0xff] }
 0x73c   :  { %v621_v58 = vmul.f32 %v1001_v55, %v616_v56 }
 0x73e   :  { %v626_v59 = vadd.f32 %v1002_v57, %v621_v58 }
 0x740   :  { %v627_v60 = vmax.f32 %v626_v59, 0.0 }
 0x742   :  { %v628_v61 = vpack.c.bf16 %v627_v60, %v627_v60 }
 0x744   :  { %1308 = vmatmul.mubr.bf16.vlgmr.msra.gmra.mrb[16].mxu0 %v628_v61 }
 0x745   :  { %1332 = vmatpush3.bf16.msra.mxu0 %v1525_v1  ;;  %1347 = vmatprep.mubr.msk.bf16.mxu0 %vm1477_vm0, %v1476_v0  ;;  %v1003_v1 = vld [vmem:[%s1798_s1 + $0x8] ss:$0 sm:$0xff] }
 0x746   :  { %1333 = vmatprep.subr.bf16.mxu0 %v1476_v0 }
 0x749   :  { %1334 = vmatpush3.bf16.msra.mxu0 %v1528_v2 }
 0x74a   :  { %1335 = vmatprep.subr.bf16.mxu0 %v1476_v0 }
 0x74d   :  { %1336 = vmatpush3.bf16.msra.mxu0 %v1534_v3 }
 0x74e   :  { %1337 = vmatprep.subr.bf16.mxu0 %v1476_v0 }
 0x751   :  { %1338 = vmatpush3.bf16.msra.mxu0 %v1539_v4 }
 0x752   :  { %1339 = vmatprep.subr.bf16.mxu0 %v1476_v0 }
 0x755   :  { %1340 = vmatpush3.bf16.msra.mxu0 %v1545_v5 }
 0x756   :  { %1341 = vmatprep.subr.bf16.mxu0 %v1476_v0 }
 0x759   :  { %1342 = vmatpush3.bf16.msra.mxu0 %v1551_v6  ;;  %v1409_v6 = vld [vmem:[%s1800_s3] sm:$0xff]  }
 0x75a   :  { %1343 = vmatprep.subr.bf16.mxu0 %v1476_v0 }
 0x75d   :  { %1344 = vmatpush3.bf16.msra.mxu0 %v1557_v7 }
 0x75e   :  { %1345 = vmatprep.subr.bf16.mxu0 %v1476_v0 }
 0x761   :  { %1346 = vmatpush3.bf16.msra.mxu0 %v1563_v8 }
 0x817   :  { %v733_v2 = vpop.f32.mrb[16].mxu0 }
 0x818   :  { %v734_v3 = vadd.f32 %v1003_v1, %v733_v2  ;;  %v1309_v4 = vpop.f32.mrb[17].mxu0 }
 0x819   :  { %v736_v5 = vpop.f32.mrb[18].mxu0 }
 0x81a   :  { %v741_v62 = vpack.c.bf16 %v734_v3, %v734_v3  ;;  %v1310_v63 = vpop.f32.mrb[19].mxu0 }
 0x81c   :  { %1328 = vmatmul.mubr.bf16.vlgmr.msra.gmra.mrb[16].mxu1 %v741_v62 }
 0x81d   :  { %1367 = vmatprep.mubr.msk.bf16.mxu1 %vm1477_vm0, %v1476_v0  ;;  %1352 = vmatpush3.bf16.msra.mxu1 %v1409_v6 }
 0x81e   :  { %1353 = vmatprep.subr.bf16.mxu1 %v1476_v0 }
 0x821   :  { %1354 = vmatpush3.bf16.msra.mxu1 %v1410_v15 }
 0x822   :  { %1355 = vmatprep.subr.bf16.mxu1 %v1476_v0 }
 0x825   :  { %1356 = vmatpush3.bf16.msra.mxu1 %v1411_v16 }
 0x826   :  { %1357 = vmatprep.subr.bf16.mxu1 %v1476_v0 }
 0x829   :  { %1358 = vmatpush3.bf16.msra.mxu1 %v1412_v17 }
 0x82a   :  { %1359 = vmatprep.subr.bf16.mxu1 %v1476_v0 }
 0x82d   :  { %1360 = vmatpush3.bf16.msra.mxu1 %v1413_v18 }
 0x82e   :  { %1361 = vmatprep.subr.bf16.mxu1 %v1476_v0 }
 0x831   :  { %1362 = vmatpush3.bf16.msra.mxu1 %v1414_v19 }
 0x832   :  { %1363 = vmatprep.subr.bf16.mxu1 %v1476_v0 }
 0x835   :  { %1364 = vmatpush3.bf16.msra.mxu1 %v1415_v20 }
 0x836   :  { %1365 = vmatprep.subr.bf16.mxu1 %v1476_v0 }
 0x839   :  { %1366 = vmatpush3.bf16.msra.mxu1 %v1416_v21 }
 0x8ef   :  { %v776_v7 = vpop.f32.mrb[16].mxu1 }
 0x8f0   :  { %v782_v8 = vmul.f32 0.03125, %v776_v7  ;;  %v1329_v9 = vpop.f32.mrb[17].mxu1 }
 0x8f1   :  { %v779_v10 = vpop.f32.mrb[18].mxu1 }
 0x8f2   :  { %v783_v11 = vsub.f32 %v734_v3, %v782_v8  ;;  %v1330_v12 = vpop.f32.mrb[19].mxu1 }
 0x8f4   :  { %v784_v13 = vmul.f32 %v783_v11, %v783_v11 }
 0x8f6   :  { %v785_v14 = vpack.c.bf16 %v784_v13, %v784_v13 }
 0x8f8   :  { %1348 = vmatmul.mubr.bf16.vlgmr.msra.gmra.mrb[20].mxu0 %v785_v14 }
 0x9cb   :  { %v820_v22 = vpop.f32.mrb[20].mxu0 }
 0x9cc   :  { %v826_v23 = vmul.f32 0.03125, %v820_v22  ;;  %v1349_v24 = vpop.f32.mrb[21].mxu0 }
 0x9cd   :  { %v823_v25 = vpop.f32.mrb[22].mxu0 }
 0x9ce   :  { %v827_v26 = vmax.f32 %v826_v23, 0.0  ;;  %v1350_v27 = vpop.f32.mrb[23].mxu0 }
 0x9d0   :  { %v828_v28 = vadd.f32 1e-05, %v827_v26 }
 0x9d2   :  { %1423 = vrsqrt.f32 %v828_v28 }
 0x9dc   :  { %v1424_v29 = vpop.eup %1423 }
 0x9dd   :  { %v830_v31 = vmul.f32 %v1424_v29, %v783_v11 }
 0x9df   :  { %v835_v0 = vmul.f32 %v1012_v30, %v830_v31 }
 0x9e1   :  { %v840_v33 = vadd.f32 %v1013_v32, %v835_v0 }
 0x9e3   :  { %v841_v34 = vmax.f32 %v840_v33, 0.0 }
 0x9e5   :  { %v842_v35 = vpack.c.bf16 %v841_v34, %v841_v34 }
 0x9e7   :  { %1368 = vmatmul.mubr.bf16.vlgmr.msra.gmra.mrb[20].mxu1 %v842_v35 }
 0xaba   :  { %v946_v37 = vpop.f32.mrb[20].mxu1 }
 0xabb   :  { %v947_v38 = vadd.f32 %v1014_v36, %v946_v37  ;;  %v1369_v39 = vpop.f32.mrb[21].mxu1 }
 0xabc   :  { %v949_v40 = vpop.f32.mrb[22].mxu1 }
 0xabd   :  { %953 = vst.msk [vmem:[#allocation5] sm:$0xff] %vm952_vm1, %v947_v38  ;;  %v1370_v41 = vpop.f32.mrb[23].mxu1 }
 0xabe   :  { %958 = vsyncadd [#allocation4], 64  ;;  %s1478_s16 = smov [#allocation5]  }
 0xabf   :  { %s959_s17 = sshll.u32 %s1478_s16, 4  ;;  %s960_s17 = int_to_ptr.vmem [resolvable:$true] %s959_s17 }
 0xac0   :  { %s1447_s18 = scalar_lea.vmem %s960_s17, 64  ;;  %s1451_s19 = scalar_lea.vmem %s960_s17, 128 }
 0xac1   :  { %p1448_p8 = scmp.ne.s32.totalorder %s960_s17, %s1447_s18  ;;  %p1452_p9 = scmp.lt.s32.totalorder %s960_s17, %s960_s17 }
 0xac2   :  { %p1453_p10 = scmp.lt.s32.totalorder %s1451_s19, %s1447_s18 }
 0xac4   :  { %p1454_p11 = por %p1453_p10, %p1452_p9 }
 0xac6   :  { %p1455_p12 = pnand %p1454_p11, %p1448_p8 }
 0xac8   :  { %1458 = shalt.err (!%p1455_p12)
}
 0xac9   :  { %s1459_s21 = scalar_lea.hbm %s1801_s4, 64 }
 0xaca   :  { %p1460_p13 = scmp.ne.s32.totalorder %s1801_s4, %s1459_s21  ;;  %p1463_p0 = scmp.lt.u32.totalorder %s1459_s21, %s1801_s4 }
 0xacc   :  { %p1465_p1 = pnand %p1463_p0, %p1460_p13 }
 0xace   :  { %1468 = shalt.err (!%p1465_p1)
}
 0xacf   :  { %965 = dma.vmem_to_hbm [thread:$0]  %s960_s17, 64, %s1801_s4, [#allocation4], %s1474_s25, %s1474_s25, %s1475_s26  }
 0xad0   :  { %1471 = dma.done.wait [#allocation4], 128  }
 0xad1   :  { %1472 = vsyncadd [#allocation4], 4294967168 }
 0xad2   :  { %969 = vsyncpa [#allocation3], 1 }
 0xad3   :  { %970 = vsyncpa [#allocation4], 1 }

</bundles_post_ra>
